<compile_context>
chip_gen: v7x
topology: tpu7x:2x2x1
jax: 0.10.0
libtpu: 0.0.40
codegen_flags: <defaults>
</compile_context>

<pallas_src>
import jax
import jax.numpy as jnp
from jax.experimental import pallas as pl
from jax.experimental.pallas import tpu as pltpu

_LANE = 128
_SUBLANE = 8
_TILE_ROWS = 2048          # (2048, 128) f32 tile = 1 MiB per pipeline buffer


def _mape_partial_kernel(forecast_ref, target_ref, mask_ref, out_ref):
    f = forecast_ref[...].astype(jnp.float32)      # no-op when inputs are already f32
    tgt = target_ref[...].astype(jnp.float32)
    m = mask_ref[...].astype(jnp.float32)

    # divide_no_nan: a/b, then NaN -> 0, +inf -> 0 (-inf is kept, as in the reference)
    w = m / tgt
    w = jnp.where(jnp.isnan(w) | (w == jnp.inf), 0.0, w)

    vals = jnp.abs((f - tgt) * w)
    # Lane-dense per-tile partial sum (reduce over sublanes only; XLU, not VALU).
    out_ref[...] = jnp.sum(vals, axis=0, keepdims=True)[None]   # (1, 1, 128)


def mape_loss(insample, freq, forecast, target, mask):
    """Pallas MAPE loss. `insample` and `freq` are unused (as in the PyTorch module)."""
    del insample, freq

    n_true = forecast.size
    f = forecast.reshape(-1)
    tg = target.reshape(-1)
    mk = mask.reshape(-1)

    # Lane-dense padded layout: (total_rows, 128), total_rows % tile_rows == 0,
    # tile_rows a multiple of 8 (sublane).
    rows_needed = pl.cdiv(n_true, _LANE)
    tile_rows = min(_TILE_ROWS, pl.cdiv(rows_needed, _SUBLANE) * _SUBLANE)
    total_rows = pl.cdiv(rows_needed, tile_rows) * tile_rows
    n_pad = total_rows * _LANE - n_true
    if n_pad:
        # Padded elements contribute 0: w = 0/1 = 0, |(0 - 1) * 0| = 0.
        f = jnp.pad(f, (0, n_pad))
        tg = jnp.pad(tg, (0, n_pad), constant_values=1)
        mk = jnp.pad(mk, (0, n_pad))
    f2 = f.reshape(total_rows, _LANE)
    t2 = tg.reshape(total_rows, _LANE)
    m2 = mk.reshape(total_rows, _LANE)

    num_tiles = total_rows // tile_rows

    partials = pl.pallas_call(
        _mape_partial_kernel,
        out_shape=jax.ShapeDtypeStruct((num_tiles, 1, _LANE), jnp.float32),
        grid=(num_tiles,),
        in_specs=[
            pl.BlockSpec((tile_rows, _LANE), lambda i: (i, 0)),
            pl.BlockSpec((tile_rows, _LANE), lambda i: (i, 0)),
            pl.BlockSpec((tile_rows, _LANE), lambda i: (i, 0)),
        ],
        out_specs=pl.BlockSpec((1, 1, _LANE), lambda i: (i, 0, 0)),
        compiler_params=pltpu.CompilerParams(
            dimension_semantics=("parallel",)),
    )(f2, t2, m2)

    # Final reduction + mean scaling happen exactly once, in the wrapper.
    return jnp.sum(partials) * (1.0 / n_true)


if __name__ == "__main__":
    key = jax.random.PRNGKey(0)
    k1, k2, k3 = jax.random.split(key, 3)

    B, T = 2, 8  # batch, time
    forecast = jax.random.normal(k1, (B, T), dtype=jnp.float32)
    target = jax.random.normal(k2, (B, T), dtype=jnp.float32)
    # 0/1 mask
    mask = (jax.random.uniform(k3, (B, T)) > 0.3).astype(jnp.float32)
    # include a zero target under an active mask to exercise the inf->0 path
    target = target.at[0, 0].set(0.0)
    mask = mask.at[0, 0].set(1.0)

    insample = jnp.zeros((B, T), dtype=jnp.float32)  # unused by MAPE
    freq = 1  # unused by MAPE

    loss = mape_loss(insample, freq, forecast, target, mask)
    jax.block_until_ready(loss)

    # pure-JAX reference check
    w_ref = mask / target
    w_ref = jnp.where(jnp.isnan(w_ref), 0.0, w_ref)
    w_ref = jnp.where(w_ref == jnp.inf, 0.0, w_ref)
    ref = jnp.mean(jnp.abs((forecast - target) * w_ref))
    assert jnp.allclose(loss, ref, rtol=1e-5, atol=1e-6), (loss, ref)

    print("KERNEL_OK")
</pallas_src>

<mosaic_0001>
module attributes {stable_mosaic.version = 11 : i64} {
  func.func @_mape_partial_kernel(%arg0: i32, %arg1: memref<8x128xf32, #tpu.memory_space<vmem>>, %arg2: memref<8x128xf32, #tpu.memory_space<vmem>>, %arg3: memref<8x128xf32, #tpu.memory_space<vmem>>, %arg4: memref<1x1x128xf32, #tpu.memory_space<vmem>>) attributes {dimension_semantics = [#tpu.dimension_semantics<parallel>], iteration_bounds = array<i64: 1>, scalar_prefetch = 0 : i64, scratch_operands = 0 : i64, tpu.core_type = #tpu.core_type<tc>, window_params = [{transform_indices = @transform_0, window_bounds = array<i64: 8, 128>}, {transform_indices = @transform_1, window_bounds = array<i64: 8, 128>}, {transform_indices = @transform_2, window_bounds = array<i64: 8, 128>}, {transform_indices = @transform_3, window_bounds = array<i64: 1, 1, 128>}]} {
    %c0 = arith.constant 0 : index
    %c0_0 = arith.constant 0 : index
    %0 = vector.load %arg1[%c0, %c0_0] : memref<8x128xf32, #tpu.memory_space<vmem>>, vector<8x128xf32>
    %c0_1 = arith.constant 0 : index
    %c0_2 = arith.constant 0 : index
    %1 = vector.load %arg2[%c0_1, %c0_2] : memref<8x128xf32, #tpu.memory_space<vmem>>, vector<8x128xf32>
    %c0_3 = arith.constant 0 : index
    %c0_4 = arith.constant 0 : index
    %2 = vector.load %arg3[%c0_3, %c0_4] : memref<8x128xf32, #tpu.memory_space<vmem>>, vector<8x128xf32>
    %3 = arith.divf %2, %1 : vector<8x128xf32>
    %4 = arith.cmpf one, %3, %3 : vector<8x128xf32>
    %cst = arith.constant 0x7F800000 : f32
    %5 = vector.broadcast %cst : f32 to vector<8x128xf32>
    %6 = arith.cmpf oeq, %3, %5 : vector<8x128xf32>
    %7 = arith.ori %4, %6 : vector<8x128xi1>
    %cst_5 = arith.constant 0.000000e+00 : f32
    %8 = vector.broadcast %cst_5 : f32 to vector<8x128xf32>
    %9 = arith.select %7, %8, %3 : vector<8x128xi1>, vector<8x128xf32>
    %10 = arith.subf %0, %1 : vector<8x128xf32>
    %11 = arith.mulf %10, %9 : vector<8x128xf32>
    %12 = math.absf %11 : vector<8x128xf32>
    %cst_6 = arith.constant dense<0.000000e+00> : vector<128xf32>
    %13 = vector.multi_reduction <add>, %12, %cst_6 [0] : vector<8x128xf32> to vector<128xf32>
    %14 = vector.shape_cast %13 : vector<128xf32> to vector<1x128xf32>
    %15 = vector.shape_cast %14 : vector<1x128xf32> to vector<1x1x128xf32>
    %c0_7 = arith.constant 0 : index
    %c0_8 = arith.constant 0 : index
    %c0_9 = arith.constant 0 : index
    %16 = vector.load %arg4[%c0_7, %c0_8, %c0_9] : memref<1x1x128xf32, #tpu.memory_space<vmem>>, vector<1x1x128xf32>
    tpu.vector_store %arg4[%c0_7, %c0_8, %c0_9], %15 {strides = array<i32>} : memref<1x1x128xf32, #tpu.memory_space<vmem>>, vector<1x1x128xf32>,
    return
  }
  func.func @transform_0(%arg0: i32) -> (i32, i32) {
    %c0_i32 = arith.constant 0 : i32
    %c0_i32_0 = arith.constant 0 : i32
    return %arg0, %c0_i32 : i32, i32
  }
  func.func @transform_1(%arg0: i32) -> (i32, i32) {
    %c0_i32 = arith.constant 0 : i32
    %c0_i32_0 = arith.constant 0 : i32
    return %arg0, %c0_i32 : i32, i32
  }
  func.func @transform_2(%arg0: i32) -> (i32, i32) {
    %c0_i32 = arith.constant 0 : i32
    %c0_i32_0 = arith.constant 0 : i32
    return %arg0, %c0_i32 : i32, i32
  }
  func.func @transform_3(%arg0: i32) -> (i32, i32, i32) {
    %c0_i32 = arith.constant 0 : i32
    %c0_i32_0 = arith.constant 0 : i32
    %c0_i32_1 = arith.constant 0 : i32
    return %arg0, %c0_i32, %c0_i32_0 : i32, i32, i32
  }
}

</mosaic_0001>

<bundles_post_ra>
// kernel: tpu_custom_call.1
= control target key start
LH: loop header
LB: loop body
LE: loop exit
PB: predicated region body
PF: predicated region fallthrough
CT: control target
= control target key end

     0   :  { %8 = vsyncpa [#allocation3], 0  ;;  %s257_s0 = inlined_call_operand.hbm [shape: f32[8,128], index: 0, kind: input, shape index: {}]   ;;  %s258_s1 = inlined_call_operand.hbm [shape: f32[8,128], index: 1, kind: input, shape index: {}]   ;;  %s259_s2 = inlined_call_operand.hbm [shape: f32[8,128], index: 2, kind: input, shape index: {}]   ;;  %s260_s3 = inlined_call_operand.hbm [shape: f32[1,1,128], index: 3, kind: output, shape index: {}]  }
   0x1   :  { %9 = vsyncpa [#allocation6], 0 }
   0x2   :  { %10 = vsyncpa [#allocation4], 0  ;;  %s185_s12 = smov [#allocation5]   ;;  %s186_s14 = smov [#allocation2]  }
   0x3   :  { %s27_s13 = sshll.u32 %s185_s12, 4  ;;  %s17_s15 = sshll.u32 %s186_s14, 4  ;;  %s28_s13 = int_to_ptr.vmem [resolvable:$true] %s27_s13  ;;  %s18_s15 = int_to_ptr.vmem [resolvable:$true] %s17_s15 }
   0x4   :  { %s91_s18 = scalar_lea.hbm %s258_s1, 128 }
   0x5   :  { %p92_p0 = scmp.ne.s32.totalorder %s258_s1, %s91_s18  ;;  %p95_p1 = scmp.lt.u32.totalorder %s91_s18, %s258_s1 }
   0x7   :  { %p97_p2 = pnand %p95_p1, %p92_p0 }
   0x9   :  { %100 = shalt.err (!%p97_p2)
}
   0xa   :  { %s101_s23 = scalar_lea.vmem %s28_s13, 128  ;;  %p106_p4 = scmp.lt.s32.totalorder %s28_s13, %s28_s13 }
   0xb   :  { %p102_p3 = scmp.ne.s32.totalorder %s28_s13, %s101_s23  ;;  %p107_p5 = scmp.lt.s32.totalorder %s101_s23, %s101_s23 }
   0xd   :  { %p108_p6 = por %p107_p5, %p106_p4 }
   0xf   :  { %p109_p7 = pnand %p108_p6, %p102_p3 }
  0x11   :  { %112 = shalt.err (!%p109_p7)
}
  0x12   :  { %30 = dma.hbm_to_vmem [thread:$0]  %s258_s1, 128, %s28_s13, [#allocation6]  }
  0x13   :  { %s113_s28 = scalar_lea.hbm %s257_s0, 128 }
  0x14   :  { %p114_p8 = scmp.ne.s32.totalorder %s257_s0, %s113_s28  ;;  %p117_p9 = scmp.lt.u32.totalorder %s113_s28, %s257_s0 }
  0x16   :  { %p119_p10 = pnand %p117_p9, %p114_p8 }
  0x18   :  { %122 = shalt.err (!%p119_p10)
}
  0x19   :  { %s123_s6 = scalar_lea.vmem %s18_s15, 128  ;;  %p128_p12 = scmp.lt.s32.totalorder %s18_s15, %s18_s15 }
  0x1a   :  { %p124_p11 = scmp.ne.s32.totalorder %s18_s15, %s123_s6  ;;  %p129_p13 = scmp.lt.s32.totalorder %s123_s6, %s123_s6 }
  0x1c   :  { %p130_p0 = por %p129_p13, %p128_p12 }
  0x1e   :  { %p131_p1 = pnand %p130_p0, %p124_p11 }
  0x20   :  { %134 = shalt.err (!%p131_p1)
}
  0x21   :  { %20 = dma.hbm_to_vmem [thread:$0]  %s257_s0, 128, %s18_s15, [#allocation3]  }
  0x22   :  { %s187_s8 = smov [#allocation7]   ;;  %s135_s12 = scalar_lea.hbm %s259_s2, 128 }
  0x23   :  { %s37_s9 = sshll.u32 %s187_s8, 4  ;;  %p136_p2 = scmp.ne.s32.totalorder %s259_s2, %s135_s12  ;;  %s38_s9 = int_to_ptr.vmem [resolvable:$true] %s37_s9 }
  0x24   :  { %p139_p3 = scmp.lt.u32.totalorder %s135_s12, %s259_s2 }
  0x26   :  { %p141_p4 = pnand %p139_p3, %p136_p2 }
  0x28   :  { %144 = shalt.err (!%p141_p4)
}
  0x29   :  { %s145_s18 = scalar_lea.vmem %s38_s9, 128  ;;  %p150_p6 = scmp.lt.s32.totalorder %s38_s9, %s38_s9 }
  0x2a   :  { %p146_p5 = scmp.ne.s32.totalorder %s38_s9, %s145_s18  ;;  %p151_p7 = scmp.lt.s32.totalorder %s145_s18, %s145_s18 }
  0x2c   :  { %p152_p8 = por %p151_p7, %p150_p6 }
  0x2e   :  { %p153_p9 = pnand %p152_p8, %p146_p5 }
  0x30   :  { %156 = shalt.err (!%p153_p9)
}
  0x31   :  { %40 = dma.hbm_to_vmem [thread:$0]  %s259_s2, 128, %s38_s9, [#allocation6]  }
  0x32   :  { %179 = dma.done.wait [#allocation3], 128  }
  0x33   :  { %180 = vsyncadd [#allocation3], 4294967168 }
  0x34   :  { %181 = dma.done.wait [#allocation6], 256  }
  0x35   :  { %182 = vsyncadd [#allocation6], 4294967040  ;;  %v51_v0 = vld [vmem:[#allocation5] sm:$0xff]  ;;  %v52_v1 = vld [vmem:[#allocation7] sm:$0xff]  ;;  %s188_s2 = smov [#allocation8]  }
  0x36   :  { %89 = vrcp.f32 %v51_v0  ;;  %v50_v2 = vld [vmem:[#allocation2] sm:$0xff]  ;;  %s75_s19 = sshll.u32 %s188_s2, 4  ;;  %s76_s19 = int_to_ptr.vmem [resolvable:$true] %s75_s19 }
  0x37   :  { %v59_v5 = vsub.f32 %v50_v2, %v51_v0  ;;  %s157_s20 = scalar_lea.vmem %s76_s19, 16  ;;  %s161_s21 = scalar_lea.vmem %s76_s19, 32 }
  0x38   :  { %p158_p10 = scmp.ne.s32.totalorder %s76_s19, %s157_s20  ;;  %p162_p11 = scmp.lt.s32.totalorder %s76_s19, %s76_s19 }
  0x39   :  { %p163_p12 = scmp.lt.s32.totalorder %s161_s21, %s157_s20 }
  0x3b   :  { %p164_p13 = por %p163_p12, %p162_p11 }
  0x3d   :  { %p165_p0 = pnand %p164_p13, %p158_p10 }
  0x40   :  { %v90_v3 = vpop.eup %89 }
  0x41   :  { %v54_v4 = vmul.f32 %v90_v3, %v52_v1 }
  0x43   :  { %vm55_vm0 = vcmp.ne.f32.partialorder %v54_v4, %v54_v4  ;;  %vm56_vm1 = vcmp.eq.f32.partialorder %v54_v4, inf }
  0x44   :  { %vm57_vm2 = vmor %vm55_vm0, %vm56_vm1 }
  0x45   :  { %v58_v6 = vsel %vm57_vm2, 0.0, %v54_v4 }
  0x46   :  { %v60_v7 = vmul.f32 %v59_v5, %v58_v6 }
  0x48   :  { %v61_v8 = vand.u32 2147483647, %v60_v7 }
  0x4a   :  { %v62_v9 = vrot.slane %v61_v8, 4 }
  0x4c   :  { %v63_v10 = vadd.f32 %v62_v9, %v61_v8 }
  0x4e   :  { %v64_v11 = vrot.slane %v63_v10, 2 }
  0x50   :  { %v65_v12 = vadd.f32 %v64_v11, %v63_v10 }
  0x52   :  { %v66_v13 = vrot.slane %v65_v12, 1 }
  0x54   :  { %v67_v14 = vadd.f32 %v66_v13, %v65_v12 }
  0x56   :  { %68 = vst [vmem:[#allocation8] sm:$0x1] %v67_v14 }
  0x57   :  { %168 = shalt.err (!%p165_p0)
}
  0x58   :  { %s169_s24 = scalar_lea.hbm %s260_s3, 16 }
  0x59   :  { %p170_p1 = scmp.ne.s32.totalorder %s260_s3, %s169_s24  ;;  %p173_p2 = scmp.lt.u32.totalorder %s169_s24, %s260_s3 }
  0x5b   :  { %p175_p3 = pnand %p173_p2, %p170_p1 }
  0x5d   :  { %178 = shalt.err (!%p175_p3)
}
  0x5e   :  { %78 = dma.vmem_to_hbm [thread:$0]  %s76_s19, 16, %s260_s3, [#allocation4]  }
  0x5f   :  { %183 = dma.done.wait [#allocation4], 16  }
  0x60   :  { %184 = vsyncadd [#allocation4], 4294967280 }
  0x61   :  { %82 = vsyncpa [#allocation3], 1 }
  0x62   :  { %83 = vsyncpa [#allocation6], 1 }
  0x63   :  { %84 = vsyncpa [#allocation4], 1 }

</bundles_post_ra>
